<compile_context>
chip_gen: v7x
topology: tpu7x:2x2x1
jax: 0.10.0
libtpu: 0.0.40
codegen_flags: <defaults>
</compile_context>

<pallas_src>
import functools

import jax
import jax.numpy as jnp
from jax.experimental import pallas as pl
from jax.experimental.pallas import tpu as pltpu

LANE = 128  # TPU lane width; every padded feature block is a multiple of this.


def _round_up(x, m):
    return ((x + m - 1) // m) * m


# ----------------------------- Fused multi-step Pallas kernel -----------------------------

def _decoder_seq_kernel(tok_ref, hid0_ref, emb_ref, wx_ref, wh_ref, b_ref,
                        fcw_ref, fcb_ref, logits_ref, hid_ref, *, hidden_dim):
    """One decode step per grid iteration t. hid_ref (revisited output block, constant
    index_map) is the VMEM-resident recurrent carry across grid steps.

    Block shapes (padded, VMEM):
      tok:    (1, Bp, 1) i32            emb:   (C, 128) bf16
      hid0:   (L, Bp, 128) f32          wx/wh: (L, 128, GATE_N) bf16
      b:      (L, 1, GATE_N) f32        fcw:   (128, 128) bf16   fcb: (1, 128) f32
      logits: (1, Bp, 128) f32          hid:   (L, Bp, 128) f32  (carry + final output)
    """
    t = pl.program_id(0)
    H = hidden_dim
    n_layers, bp, hpad = hid_ref.shape
    n_cat = emb_ref.shape[0]

    # Load the initial hidden state into the carried output block once.
    @pl.when(t == 0)
    def _():
        hid_ref[...] = hid0_ref[...]

    # Embedding gather as a one-hot matmul (exact for 0/1 rows; stays on the MXU).
    tok = tok_ref[0]                                                 # (Bp, 1) i32
    cat_ids = jax.lax.broadcasted_iota(jnp.int32, (bp, n_cat), 1)
    onehot = (cat_ids == tok).astype(jnp.bfloat16)                   # (Bp, C)
    x = jnp.dot(onehot, emb_ref[...],
                preferred_element_type=jnp.float32)                  # (Bp, 128) f32

    # Lane padding for h_new (hoisted out of the layer loop).
    pad_zeros = jnp.zeros((bp, hpad - H), jnp.float32) if hpad > H else None

    # n_layers GRU cells (single time step each). Tightly gate-packed columns:
    #   [0:H)=r, [H:2H)=z, [2H:3H)=i_n (+b_ih_n), [3H:4H)=h_n (+b_hh_n)
    # r/z biases are pre-folded into b.
    for layer in range(n_layers):
        h = hid_ref[layer]                                           # (Bp, 128) f32
        g = (jnp.dot(x.astype(jnp.bfloat16), wx_ref[layer],
                     preferred_element_type=jnp.float32)
             + jnp.dot(h.astype(jnp.bfloat16), wh_ref[layer],
                       preferred_element_type=jnp.float32)
             + b_ref[layer])                                         # (Bp, GATE_N) f32
        r = jax.nn.sigmoid(g[:, 0 * H:1 * H])
        z = jax.nn.sigmoid(g[:, 1 * H:2 * H])
        n = jnp.tanh(g[:, 2 * H:3 * H] + r * g[:, 3 * H:4 * H])
        h_new = (1.0 - z) * n + z * h[:, 0:H]                        # (Bp, H)
        if pad_zeros is not None:                                    # keep pad lanes zero
            h_new = jnp.concatenate([h_new, pad_zeros], axis=-1)     # (Bp, 128)
        hid_ref[layer] = h_new                                       # full lane-dense store
        x = h_new

    # Output projection; lane-dense 128-wide store, streamed per step.
    logits_ref[0] = (
        jnp.dot(x.astype(jnp.bfloat16), fcw_ref[...],
                preferred_element_type=jnp.float32) + fcb_ref[...]
    )


# ----------------------------- Parameter init & packing -----------------------------

def _xavier_uniform(key, shape):
    fan_out, fan_in = shape
    limit = (6.0 / (fan_in + fan_out)) ** 0.5
    return jax.random.uniform(key, shape, jnp.float32, -limit, limit)


def init_raw_params(key, num_category, emb_dim, hidden_dim, n_layers):
    """Raw f32 parameters matching the PyTorch module's initializers."""
    keys = jax.random.split(key, 3 + 4 * n_layers)
    it = iter(keys)
    raw = {"embedding": _xavier_uniform(next(it), (num_category, emb_dim))}
    k = hidden_dim ** -0.5
    layers = []
    for layer in range(n_layers):
        in_dim = emb_dim if layer == 0 else hidden_dim
        layers.append({
            "w_ih": jax.random.uniform(next(it), (3 * hidden_dim, in_dim), jnp.float32, -k, k),
            "w_hh": jax.random.uniform(next(it), (3 * hidden_dim, hidden_dim), jnp.float32, -k, k),
            "b_ih": jax.random.uniform(next(it), (3 * hidden_dim,), jnp.float32, -k, k),
            "b_hh": jax.random.uniform(next(it), (3 * hidden_dim,), jnp.float32, -k, k),
        })
    raw["gru"] = layers
    raw["fc_w"] = _xavier_uniform(next(it), (num_category, hidden_dim))
    raw["fc_b"] = jax.random.uniform(next(it), (num_category,), jnp.float32, -k, k)
    return raw


def pack_params(raw, num_category, emb_dim, hidden_dim, n_layers):
    """Pack / pad params into the lane-aligned, tightly gate-packed bf16 layout."""
    H = hidden_dim
    if num_category > LANE or emb_dim > LANE or hidden_dim > LANE:
        raise ValueError(
            "pack_params supports num_category, emb_dim, hidden_dim <= %d; got (%d, %d, %d)"
            % (LANE, num_category, emb_dim, hidden_dim))
    gate_n = _round_up(4 * H, LANE)   # tightly packed gate columns, lane-aligned total width

    emb = jnp.zeros((num_category, LANE), jnp.float32).at[:, :emb_dim].set(raw["embedding"])

    w_x = jnp.zeros((n_layers, LANE, gate_n), jnp.float32)
    w_h = jnp.zeros((n_layers, LANE, gate_n), jnp.float32)
    b = jnp.zeros((n_layers, 1, gate_n), jnp.float32)
    for layer, p in enumerate(raw["gru"]):
        in_dim = emb_dim if layer == 0 else H
        w_ih_t = p["w_ih"].T            # (in_dim, 3H), gate order (r, z, n)
        w_hh_t = p["w_hh"].T            # (H, 3H)
        # input weights: r | z | i_n  at columns [0:3H)
        w_x = w_x.at[layer, :in_dim, 0:3 * H].set(w_ih_t)
        # hidden weights: r | z at [0:2H), h_n at [3H:4H) (kept separate: r multiplies it)
        w_h = w_h.at[layer, :H, 0:2 * H].set(w_hh_t[:, 0:2 * H])
        w_h = w_h.at[layer, :H, 3 * H:4 * H].set(w_hh_t[:, 2 * H:])
        # biases: fold r/z, keep n-gate biases separate
        b = b.at[layer, 0, 0:2 * H].set(p["b_ih"][0:2 * H] + p["b_hh"][0:2 * H])
        b = b.at[layer, 0, 2 * H:3 * H].set(p["b_ih"][2 * H:])
        b = b.at[layer, 0, 3 * H:4 * H].set(p["b_hh"][2 * H:])

    fc_w = jnp.zeros((LANE, LANE), jnp.float32).at[:H, :num_category].set(raw["fc_w"].T)
    fc_b = jnp.zeros((1, LANE), jnp.float32).at[0, :num_category].set(raw["fc_b"])

    return {
        "emb": emb.astype(jnp.bfloat16),
        "w_x": w_x.astype(jnp.bfloat16),
        "w_h": w_h.astype(jnp.bfloat16),
        "b": b,                          # f32
        "fc_w": fc_w.astype(jnp.bfloat16),
        "fc_b": fc_b,                    # f32
    }


# ----------------------------- Decoder forward (thin wrappers) -----------------------------

def decoder_forward_seq(params, tokens, hidden):
    """Teacher-forced multi-step decode; the step loop is the Pallas grid.

    tokens: (T, B) int32; hidden: (n_layers, B, H) f32.
    Returns (predictions (T, B, num_category), new_hidden (n_layers, B, H))."""
    T, B = tokens.shape
    n_layers, _, H = hidden.shape
    num_category = params["emb"].shape[0]
    gate_n = params["w_x"].shape[-1]
    Bp = _round_up(B, 16)   # bf16 MXU operands have a (16,128) min tile -> pad to 16 sublanes

    # NOTE: padded batch rows B..Bp run the GRU on token 0 with zero hidden; their results
    # are sliced off below, so this is only (negligible) wasted work, never read.
    tok_p = jnp.zeros((T, Bp, 1), jnp.int32).at[:, :B, 0].set(tokens.astype(jnp.int32))
    hid_p = jnp.zeros((n_layers, Bp, LANE), jnp.float32).at[:, :B, :H].set(hidden)

    kernel = functools.partial(_decoder_seq_kernel, hidden_dim=H)

    logits_p, new_hid_p = pl.pallas_call(
        kernel,
        grid=(T,),
        in_specs=[
            pl.BlockSpec((1, Bp, 1), lambda t: (t, 0, 0)),              # tokens: streamed per step
            pl.BlockSpec((n_layers, Bp, LANE), lambda t: (0, 0, 0)),    # initial hidden: once
            pl.BlockSpec((num_category, LANE), lambda t: (0, 0)),       # weights below: constant
            pl.BlockSpec((n_layers, LANE, gate_n), lambda t: (0, 0, 0)),  # index_maps -> DMA'd once,
            pl.BlockSpec((n_layers, LANE, gate_n), lambda t: (0, 0, 0)),  # VMEM-resident across steps
            pl.BlockSpec((n_layers, 1, gate_n), lambda t: (0, 0, 0)),
            pl.BlockSpec((LANE, LANE), lambda t: (0, 0)),
            pl.BlockSpec((1, LANE), lambda t: (0, 0)),
        ],
        out_specs=(
            pl.BlockSpec((1, Bp, LANE), lambda t: (t, 0, 0)),           # lane-dense per-step logits
            pl.BlockSpec((n_layers, Bp, LANE), lambda t: (0, 0, 0)),    # revisited: VMEM carry
        ),
        out_shape=(
            jax.ShapeDtypeStruct((T, Bp, LANE), jnp.float32),
            jax.ShapeDtypeStruct((n_layers, Bp, LANE), jnp.float32),
        ),
        input_output_aliases={1: 1},     # hid_p -> new hidden: no extra HBM buffer / copy
        compiler_params=pltpu.CompilerParams(
            dimension_semantics=("arbitrary",)),   # recurrent step axis must run in order
    )(tok_p, hid_p, params["emb"], params["w_x"], params["w_h"], params["b"],
      params["fc_w"], params["fc_b"])

    return logits_p[:, :B, :num_category], new_hid_p[:, :B, :H]


def decoder_forward(params, tokens, hidden):
    """Single decode step == Decoder.forward(input, hidden, _) (dropout is eval-mode identity).
    tokens: (B,) int32; hidden: (n_layers, B, H) f32."""
    preds, new_hidden = decoder_forward_seq(params, tokens[None, :], hidden)
    return preds[0], new_hidden


# ----------------------------- Pure-JAX reference -----------------------------

def decoder_forward_ref(raw, tokens, hidden, emulate_bf16=True):
    """Standard (unpacked) GRU math. emulate_bf16=True reproduces the kernel's bf16 weight
    storage + bf16 matmul-input casts (f32 everywhere else)."""
    cast = ((lambda a: a.astype(jnp.bfloat16).astype(jnp.float32))
            if emulate_bf16 else (lambda a: a))
    H = hidden.shape[-1]
    x = jnp.take(cast(raw["embedding"]), tokens, axis=0)
    new_hidden = []
    for layer, p in enumerate(raw["gru"]):
        h = hidden[layer]
        xb, hb = cast(x), cast(h)
        gi = xb @ cast(p["w_ih"]).T + p["b_ih"]
        gh = hb @ cast(p["w_hh"]).T + p["b_hh"]
        r = jax.nn.sigmoid(gi[:, :H] + gh[:, :H])
        z = jax.nn.sigmoid(gi[:, H:2 * H] + gh[:, H:2 * H])
        n = jnp.tanh(gi[:, 2 * H:] + r * gh[:, 2 * H:])
        h_new = (1.0 - z) * n + z * h
        new_hidden.append(h_new)
        x = h_new
    pred = cast(x) @ cast(raw["fc_w"]).T + raw["fc_b"]
    return pred, jnp.stack(new_hidden, axis=0)


def decoder_forward_seq_ref(raw, tokens_seq, hidden, emulate_bf16=True):
    preds = []
    for t in range(tokens_seq.shape[0]):
        pred, hidden = decoder_forward_ref(raw, tokens_seq[t], hidden, emulate_bf16)
        preds.append(pred)
    return jnp.stack(preds, axis=0), hidden


# ----------------------------- Main -----------------------------

if __name__ == "__main__":
    num_category = 16
    emb_dim = 8
    hidden_dim = 32
    n_layers = 2
    batch = 4
    seq_len = 6

    key = jax.random.PRNGKey(0)
    k_param, k_tok, k_hid = jax.random.split(key, 3)

    raw = init_raw_params(k_param, num_category, emb_dim, hidden_dim, n_layers)
    params = pack_params(raw, num_category, emb_dim, hidden_dim, n_layers)

    tokens_seq = jax.random.randint(k_tok, (seq_len, batch), 0, num_category, dtype=jnp.int32)
    hidden = jax.random.normal(k_hid, (n_layers, batch, hidden_dim), jnp.float32)

    # --- Single step (exactly the module's forward) ---
    pred, new_hidden = jax.jit(decoder_forward)(params, tokens_seq[0], hidden)
    pred = jax.block_until_ready(pred)
    new_hidden = jax.block_until_ready(new_hidden)
    assert pred.shape == (batch, num_category)
    assert new_hidden.shape == (n_layers, batch, hidden_dim)

    pred_ref, new_hid_ref = decoder_forward_ref(raw, tokens_seq[0], hidden, emulate_bf16=True)
    assert jnp.allclose(pred, pred_ref, atol=1e-4, rtol=1e-4)
    assert jnp.allclose(new_hidden, new_hid_ref, atol=1e-4, rtol=1e-4)

    pred_f32, hid_f32 = decoder_forward_ref(raw, tokens_seq[0], hidden, emulate_bf16=False)
    assert jnp.allclose(pred, pred_f32, atol=1e-1, rtol=1e-1)
    assert jnp.allclose(new_hidden, hid_f32, atol=1e-1, rtol=1e-1)

    # --- Multi-step decode with the step loop hoisted into the Pallas grid ---
    preds_seq, hid_seq = jax.jit(decoder_forward_seq)(params, tokens_seq, hidden)
    preds_seq = jax.block_until_ready(preds_seq)
    hid_seq = jax.block_until_ready(hid_seq)
    assert preds_seq.shape == (seq_len, batch, num_category)
    assert hid_seq.shape == (n_layers, batch, hidden_dim)

    preds_seq_ref, hid_seq_ref = decoder_forward_seq_ref(raw, tokens_seq, hidden, emulate_bf16=True)
    assert jnp.allclose(preds_seq, preds_seq_ref, atol=2e-4, rtol=2e-4)
    assert jnp.allclose(hid_seq, hid_seq_ref, atol=2e-4, rtol=2e-4)

    print("KERNEL_OK")
</pallas_src>

<mosaic_0001>
module attributes {stable_mosaic.version = 11 : i64} {
  func.func @_decoder_seq_kernel(%arg0: i32, %arg1: memref<1x16x1xi32, #tpu.memory_space<vmem>>, %arg2: memref<2x16x128xf32, #tpu.memory_space<vmem>>, %arg3: memref<16x128xbf16, #tpu.memory_space<vmem>>, %arg4: memref<2x128x128xbf16, #tpu.memory_space<vmem>>, %arg5: memref<2x128x128xbf16, #tpu.memory_space<vmem>>, %arg6: memref<2x1x128xf32, #tpu.memory_space<vmem>>, %arg7: memref<128x128xbf16, #tpu.memory_space<vmem>>, %arg8: memref<1x128xf32, #tpu.memory_space<vmem>>, %arg9: memref<1x16x128xf32, #tpu.memory_space<vmem>>, %arg10: memref<2x16x128xf32, #tpu.memory_space<vmem>>) attributes {dimension_semantics = [#tpu.dimension_semantics<arbitrary>], iteration_bounds = array<i64: 1>, scalar_prefetch = 0 : i64, scratch_operands = 0 : i64, tpu.core_type = #tpu.core_type<tc>, window_params = [{transform_indices = @transform_0, window_bounds = array<i64: 1, 16, 1>}, {pipeline_mode = #tpu.pipeline_mode<synchronous>, transform_indices = @transform_1, window_bounds = array<i64: 2, 16, 128>}, {pipeline_mode = #tpu.pipeline_mode<synchronous>, transform_indices = @transform_2, window_bounds = array<i64: 16, 128>}, {pipeline_mode = #tpu.pipeline_mode<synchronous>, transform_indices = @transform_3, window_bounds = array<i64: 2, 128, 128>}, {pipeline_mode = #tpu.pipeline_mode<synchronous>, transform_indices = @transform_4, window_bounds = array<i64: 2, 128, 128>}, {pipeline_mode = #tpu.pipeline_mode<synchronous>, transform_indices = @transform_5, window_bounds = array<i64: 2, 1, 128>}, {pipeline_mode = #tpu.pipeline_mode<synchronous>, transform_indices = @transform_6, window_bounds = array<i64: 128, 128>}, {pipeline_mode = #tpu.pipeline_mode<synchronous>, transform_indices = @transform_7, window_bounds = array<i64: 1, 128>}, {transform_indices = @transform_8, window_bounds = array<i64: 1, 16, 128>}, {pipeline_mode = #tpu.pipeline_mode<synchronous>, transform_indices = @transform_9, window_bounds = array<i64: 2, 16, 128>}]} {
    %c0_i32 = arith.constant 0 : i32
    %0 = arith.cmpi eq, %arg0, %c0_i32 : i32
    %1 = arith.extui %0 : i1 to i32
    %c0_i32_0 = arith.constant 0 : i32
    %2 = arith.cmpi ne, %1, %c0_i32_0 : i32
    scf.if %2 {
      %c0_53 = arith.constant 0 : index
      %c0_54 = arith.constant 0 : index
      %c0_55 = arith.constant 0 : index
      %107 = vector.load %arg2[%c0_53, %c0_54, %c0_55] : memref<2x16x128xf32, #tpu.memory_space<vmem>>, vector<2x16x128xf32>
      %c0_56 = arith.constant 0 : index
      %c0_57 = arith.constant 0 : index
      %c0_58 = arith.constant 0 : index
      %108 = vector.load %arg10[%c0_56, %c0_57, %c0_58] : memref<2x16x128xf32, #tpu.memory_space<vmem>>, vector<2x16x128xf32>
      tpu.vector_store %arg10[%c0_56, %c0_57, %c0_58], %107 {strides = array<i32>} : memref<2x16x128xf32, #tpu.memory_space<vmem>>, vector<2x16x128xf32>,
    } else {
    }
    %c0 = arith.constant 0 : index
    %c0_1 = arith.constant 0 : index
    %c0_2 = arith.constant 0 : index
    %3 = vector.load %arg1[%c0, %c0_1, %c0_2] : memref<1x16x1xi32, #tpu.memory_space<vmem>>, vector<1x16x1xi32>
    %4 = vector.shape_cast %3 : vector<1x16x1xi32> to vector<16x1xi32>
    %5 = tpu.iota {dimensions = array<i32: 1>} : vector<16x16xi32>
    %6 = vector.broadcast %4 : vector<16x1xi32> to vector<16x16xi32>
    %7 = arith.cmpi eq, %5, %6 : vector<16x16xi32>
    %8 = arith.extui %7 : vector<16x16xi1> to vector<16x16xi32>
    %9 = arith.sitofp %8 : vector<16x16xi32> to vector<16x16xf32>
    %10 = arith.truncf %9 : vector<16x16xf32> to vector<16x16xbf16>
    %c0_3 = arith.constant 0 : index
    %c0_4 = arith.constant 0 : index
    %11 = vector.load %arg3[%c0_3, %c0_4] : memref<16x128xbf16, #tpu.memory_space<vmem>>, vector<16x128xbf16>
    %cst = arith.constant dense<0.000000e+00> : vector<16x128xf32>
    %12 = tpu.matmul %10, %11, %cst {dimension_numbers = #tpu.dot_dimension_numbers<[1], [0], [0], [1], [0, 0, 1, 1], [], []>} : vector<16x16xbf16>, vector<16x128xbf16>, vector<16x128xf32> -> vector<16x128xf32>
    %cst_5 = arith.constant 0.000000e+00 : f32
    %13 = vector.broadcast %cst_5 : f32 to vector<16x96xf32>
    %c0_6 = arith.constant 0 : index
    %c0_7 = arith.constant 0 : index
    %c0_8 = arith.constant 0 : index
    %14 = vector.load %arg10[%c0_6, %c0_7, %c0_8] : memref<2x16x128xf32, #tpu.memory_space<vmem>>, vector<1x16x128xf32>
    %15 = vector.shape_cast %14 : vector<1x16x128xf32> to vector<16x128xf32>
    %16 = arith.truncf %12 : vector<16x128xf32> to vector<16x128xbf16>
    %c0_9 = arith.constant 0 : index
    %c0_10 = arith.constant 0 : index
    %c0_11 = arith.constant 0 : index
    %17 = vector.load %arg4[%c0_9, %c0_10, %c0_11] : memref<2x128x128xbf16, #tpu.memory_space<vmem>>, vector<1x128x128xbf16>
    %18 = vector.shape_cast %17 : vector<1x128x128xbf16> to vector<128x128xbf16>
    %cst_12 = arith.constant dense<0.000000e+00> : vector<16x128xf32>
    %19 = tpu.matmul %16, %18, %cst_12 {dimension_numbers = #tpu.dot_dimension_numbers<[1], [0], [0], [1], [0, 0, 1, 1], [], []>} : vector<16x128xbf16>, vector<128x128xbf16>, vector<16x128xf32> -> vector<16x128xf32>
    %20 = arith.truncf %15 : vector<16x128xf32> to vector<16x128xbf16>
    %c0_13 = arith.constant 0 : index
    %c0_14 = arith.constant 0 : index
    %c0_15 = arith.constant 0 : index
    %21 = vector.load %arg5[%c0_13, %c0_14, %c0_15] : memref<2x128x128xbf16, #tpu.memory_space<vmem>>, vector<1x128x128xbf16>
    %22 = vector.shape_cast %21 : vector<1x128x128xbf16> to vector<128x128xbf16>
    %cst_16 = arith.constant dense<0.000000e+00> : vector<16x128xf32>
    %23 = tpu.matmul %20, %22, %cst_16 {dimension_numbers = #tpu.dot_dimension_numbers<[1], [0], [0], [1], [0, 0, 1, 1], [], []>} : vector<16x128xbf16>, vector<128x128xbf16>, vector<16x128xf32> -> vector<16x128xf32>
    %24 = arith.addf %19, %23 : vector<16x128xf32>
    %c0_17 = arith.constant 0 : index
    %c0_18 = arith.constant 0 : index
    %c0_19 = arith.constant 0 : index
    %25 = vector.load %arg6[%c0_17, %c0_18, %c0_19] : memref<2x1x128xf32, #tpu.memory_space<vmem>>, vector<1x1x128xf32>
    %26 = vector.shape_cast %25 : vector<1x1x128xf32> to vector<1x128xf32>
    %27 = vector.broadcast %26 : vector<1x128xf32> to vector<16x128xf32>
    %28 = arith.addf %24, %27 : vector<16x128xf32>
    %29 = vector.extract_strided_slice %28 {offsets = [0, 0], sizes = [16, 32], strides = [1, 1]} : vector<16x128xf32> to vector<16x32xf32>
    %30 = arith.negf %29 : vector<16x32xf32>
    %31 = math.exp %30 : vector<16x32xf32>
    %cst_20 = arith.constant 1.000000e+00 : f32
    %32 = vector.broadcast %cst_20 : f32 to vector<16x32xf32>
    %33 = arith.addf %32, %31 : vector<16x32xf32>
    %34 = arith.divf %32, %33 : vector<16x32xf32>
    %35 = vector.extract_strided_slice %28 {offsets = [0, 32], sizes = [16, 32], strides = [1, 1]} : vector<16x128xf32> to vector<16x32xf32>
    %36 = arith.negf %35 : vector<16x32xf32>
    %37 = math.exp %36 : vector<16x32xf32>
    %cst_21 = arith.constant 1.000000e+00 : f32
    %38 = vector.broadcast %cst_21 : f32 to vector<16x32xf32>
    %39 = arith.addf %38, %37 : vector<16x32xf32>
    %40 = arith.divf %38, %39 : vector<16x32xf32>
    %41 = vector.extract_strided_slice %28 {offsets = [0, 64], sizes = [16, 32], strides = [1, 1]} : vector<16x128xf32> to vector<16x32xf32>
    %42 = vector.extract_strided_slice %28 {offsets = [0, 96], sizes = [16, 32], strides = [1, 1]} : vector<16x128xf32> to vector<16x32xf32>
    %43 = arith.mulf %34, %42 : vector<16x32xf32>
    %44 = arith.addf %41, %43 : vector<16x32xf32>
    %45 = math.tanh %44 : vector<16x32xf32>
    %cst_22 = arith.constant 1.000000e+00 : f32
    %46 = vector.broadcast %cst_22 : f32 to vector<16x32xf32>
    %47 = arith.subf %46, %40 : vector<16x32xf32>
    %48 = arith.mulf %47, %45 : vector<16x32xf32>
    %49 = vector.extract_strided_slice %15 {offsets = [0, 0], sizes = [16, 32], strides = [1, 1]} : vector<16x128xf32> to vector<16x32xf32>
    %50 = arith.mulf %40, %49 : vector<16x32xf32>
    %51 = arith.addf %48, %50 : vector<16x32xf32>
    %52 = tpu.concatenate %51, %13 in 1 : vector<16x32xf32>, vector<16x96xf32> -> vector<16x128xf32>
    %c0_23 = arith.constant 0 : index
    %c0_24 = arith.constant 0 : index
    %c0_25 = arith.constant 0 : index
    %53 = vector.load %arg10[%c0_23, %c0_24, %c0_25] : memref<2x16x128xf32, #tpu.memory_space<vmem>>, vector<1x16x128xf32>
    %54 = vector.shape_cast %53 : vector<1x16x128xf32> to vector<16x128xf32>
    %55 = vector.shape_cast %52 : vector<16x128xf32> to vector<1x16x128xf32>
    tpu.vector_store %arg10[%c0_23, %c0_24, %c0_25], %55 {strides = array<i32>} : memref<2x16x128xf32, #tpu.memory_space<vmem>>, vector<1x16x128xf32>,
    %c1 = arith.constant 1 : index
    %c0_26 = arith.constant 0 : index
    %c0_27 = arith.constant 0 : index
    %56 = vector.load %arg10[%c1, %c0_26, %c0_27] : memref<2x16x128xf32, #tpu.memory_space<vmem>>, vector<1x16x128xf32>
    %57 = vector.shape_cast %56 : vector<1x16x128xf32> to vector<16x128xf32>
    %58 = arith.truncf %52 : vector<16x128xf32> to vector<16x128xbf16>
    %c1_28 = arith.constant 1 : index
    %c0_29 = arith.constant 0 : index
    %c0_30 = arith.constant 0 : index
    %59 = vector.load %arg4[%c1_28, %c0_29, %c0_30] : memref<2x128x128xbf16, #tpu.memory_space<vmem>>, vector<1x128x128xbf16>
    %60 = vector.shape_cast %59 : vector<1x128x128xbf16> to vector<128x128xbf16>
    %cst_31 = arith.constant dense<0.000000e+00> : vector<16x128xf32>
    %61 = tpu.matmul %58, %60, %cst_31 {dimension_numbers = #tpu.dot_dimension_numbers<[1], [0], [0], [1], [0, 0, 1, 1], [], []>} : vector<16x128xbf16>, vector<128x128xbf16>, vector<16x128xf32> -> vector<16x128xf32>
    %62 = arith.truncf %57 : vector<16x128xf32> to vector<16x128xbf16>
    %c1_32 = arith.constant 1 : index
    %c0_33 = arith.constant 0 : index
    %c0_34 = arith.constant 0 : index
    %63 = vector.load %arg5[%c1_32, %c0_33, %c0_34] : memref<2x128x128xbf16, #tpu.memory_space<vmem>>, vector<1x128x128xbf16>
    %64 = vector.shape_cast %63 : vector<1x128x128xbf16> to vector<128x128xbf16>
    %cst_35 = arith.constant dense<0.000000e+00> : vector<16x128xf32>
    %65 = tpu.matmul %62, %64, %cst_35 {dimension_numbers = #tpu.dot_dimension_numbers<[1], [0], [0], [1], [0, 0, 1, 1], [], []>} : vector<16x128xbf16>, vector<128x128xbf16>, vector<16x128xf32> -> vector<16x128xf32>
    %66 = arith.addf %61, %65 : vector<16x128xf32>
    %c1_36 = arith.constant 1 : index
    %c0_37 = arith.constant 0 : index
    %c0_38 = arith.constant 0 : index
    %67 = vector.load %arg6[%c1_36, %c0_37, %c0_38] : memref<2x1x128xf32, #tpu.memory_space<vmem>>, vector<1x1x128xf32>
    %68 = vector.shape_cast %67 : vector<1x1x128xf32> to vector<1x128xf32>
    %69 = vector.broadcast %68 : vector<1x128xf32> to vector<16x128xf32>
    %70 = arith.addf %66, %69 : vector<16x128xf32>
    %71 = vector.extract_strided_slice %70 {offsets = [0, 0], sizes = [16, 32], strides = [1, 1]} : vector<16x128xf32> to vector<16x32xf32>
    %72 = arith.negf %71 : vector<16x32xf32>
    %73 = math.exp %72 : vector<16x32xf32>
    %cst_39 = arith.constant 1.000000e+00 : f32
    %74 = vector.broadcast %cst_39 : f32 to vector<16x32xf32>
    %75 = arith.addf %74, %73 : vector<16x32xf32>
    %76 = arith.divf %74, %75 : vector<16x32xf32>
    %77 = vector.extract_strided_slice %70 {offsets = [0, 32], sizes = [16, 32], strides = [1, 1]} : vector<16x128xf32> to vector<16x32xf32>
    %78 = arith.negf %77 : vector<16x32xf32>
    %79 = math.exp %78 : vector<16x32xf32>
    %cst_40 = arith.constant 1.000000e+00 : f32
    %80 = vector.broadcast %cst_40 : f32 to vector<16x32xf32>
    %81 = arith.addf %80, %79 : vector<16x32xf32>
    %82 = arith.divf %80, %81 : vector<16x32xf32>
    %83 = vector.extract_strided_slice %70 {offsets = [0, 64], sizes = [16, 32], strides = [1, 1]} : vector<16x128xf32> to vector<16x32xf32>
    %84 = vector.extract_strided_slice %70 {offsets = [0, 96], sizes = [16, 32], strides = [1, 1]} : vector<16x128xf32> to vector<16x32xf32>
    %85 = arith.mulf %76, %84 : vector<16x32xf32>
    %86 = arith.addf %83, %85 : vector<16x32xf32>
    %87 = math.tanh %86 : vector<16x32xf32>
    %cst_41 = arith.constant 1.000000e+00 : f32
    %88 = vector.broadcast %cst_41 : f32 to vector<16x32xf32>
    %89 = arith.subf %88, %82 : vector<16x32xf32>
    %90 = arith.mulf %89, %87 : vector<16x32xf32>
    %91 = vector.extract_strided_slice %57 {offsets = [0, 0], sizes = [16, 32], strides = [1, 1]} : vector<16x128xf32> to vector<16x32xf32>
    %92 = arith.mulf %82, %91 : vector<16x32xf32>
    %93 = arith.addf %90, %92 : vector<16x32xf32>
    %94 = tpu.concatenate %93, %13 in 1 : vector<16x32xf32>, vector<16x96xf32> -> vector<16x128xf32>
    %c1_42 = arith.constant 1 : index
    %c0_43 = arith.constant 0 : index
    %c0_44 = arith.constant 0 : index
    %95 = vector.load %arg10[%c1_42, %c0_43, %c0_44] : memref<2x16x128xf32, #tpu.memory_space<vmem>>, vector<1x16x128xf32>
    %96 = vector.shape_cast %95 : vector<1x16x128xf32> to vector<16x128xf32>
    %97 = vector.shape_cast %94 : vector<16x128xf32> to vector<1x16x128xf32>
    tpu.vector_store %arg10[%c1_42, %c0_43, %c0_44], %97 {strides = array<i32>} : memref<2x16x128xf32, #tpu.memory_space<vmem>>, vector<1x16x128xf32>,
    %98 = arith.truncf %94 : vector<16x128xf32> to vector<16x128xbf16>
    %c0_45 = arith.constant 0 : index
    %c0_46 = arith.constant 0 : index
    %99 = vector.load %arg7[%c0_45, %c0_46] : memref<128x128xbf16, #tpu.memory_space<vmem>>, vector<128x128xbf16>
    %cst_47 = arith.constant dense<0.000000e+00> : vector<16x128xf32>
    %100 = tpu.matmul %98, %99, %cst_47 {dimension_numbers = #tpu.dot_dimension_numbers<[1], [0], [0], [1], [0, 0, 1, 1], [], []>} : vector<16x128xbf16>, vector<128x128xbf16>, vector<16x128xf32> -> vector<16x128xf32>
    %c0_48 = arith.constant 0 : index
    %c0_49 = arith.constant 0 : index
    %101 = vector.load %arg8[%c0_48, %c0_49] : memref<1x128xf32, #tpu.memory_space<vmem>>, vector<1x128xf32>
    %102 = vector.broadcast %101 : vector<1x128xf32> to vector<16x128xf32>
    %103 = arith.addf %100, %102 : vector<16x128xf32>
    %c0_50 = arith.constant 0 : index
    %c0_51 = arith.constant 0 : index
    %c0_52 = arith.constant 0 : index
    %104 = vector.load %arg9[%c0_50, %c0_51, %c0_52] : memref<1x16x128xf32, #tpu.memory_space<vmem>>, vector<1x16x128xf32>
    %105 = vector.shape_cast %104 : vector<1x16x128xf32> to vector<16x128xf32>
    %106 = vector.shape_cast %103 : vector<16x128xf32> to vector<1x16x128xf32>
    tpu.vector_store %arg9[%c0_50, %c0_51, %c0_52], %106 {strides = array<i32>} : memref<1x16x128xf32, #tpu.memory_space<vmem>>, vector<1x16x128xf32>,
    return
  }
  func.func @transform_0(%arg0: i32) -> (i32, i32, i32) {
    %c0_i32 = arith.constant 0 : i32
    %c0_i32_0 = arith.constant 0 : i32
    %c0_i32_1 = arith.constant 0 : i32
    return %arg0, %c0_i32, %c0_i32_0 : i32, i32, i32
  }
  func.func @transform_1(%arg0: i32) -> (i32, i32, i32) {
    %c0_i32 = arith.constant 0 : i32
    %c0_i32_0 = arith.constant 0 : i32
    %c0_i32_1 = arith.constant 0 : i32
    %c0_i32_2 = arith.constant 0 : i32
    return %c0_i32, %c0_i32_0, %c0_i32_1 : i32, i32, i32
  }
  func.func @transform_2(%arg0: i32) -> (i32, i32) {
    %c0_i32 = arith.constant 0 : i32
    %c0_i32_0 = arith.constant 0 : i32
    %c0_i32_1 = arith.constant 0 : i32
    return %c0_i32, %c0_i32_0 : i32, i32
  }
  func.func @transform_3(%arg0: i32) -> (i32, i32, i32) {
    %c0_i32 = arith.constant 0 : i32
    %c0_i32_0 = arith.constant 0 : i32
    %c0_i32_1 = arith.constant 0 : i32
    %c0_i32_2 = arith.constant 0 : i32
    return %c0_i32, %c0_i32_0, %c0_i32_1 : i32, i32, i32
  }
  func.func @transform_4(%arg0: i32) -> (i32, i32, i32) {
    %c0_i32 = arith.constant 0 : i32
    %c0_i32_0 = arith.constant 0 : i32
    %c0_i32_1 = arith.constant 0 : i32
    %c0_i32_2 = arith.constant 0 : i32
    return %c0_i32, %c0_i32_0, %c0_i32_1 : i32, i32, i32
  }
  func.func @transform_5(%arg0: i32) -> (i32, i32, i32) {
    %c0_i32 = arith.constant 0 : i32
    %c0_i32_0 = arith.constant 0 : i32
    %c0_i32_1 = arith.constant 0 : i32
    %c0_i32_2 = arith.constant 0 : i32
    return %c0_i32, %c0_i32_0, %c0_i32_1 : i32, i32, i32
  }
  func.func @transform_6(%arg0: i32) -> (i32, i32) {
    %c0_i32 = arith.constant 0 : i32
    %c0_i32_0 = arith.constant 0 : i32
    %c0_i32_1 = arith.constant 0 : i32
    return %c0_i32, %c0_i32_0 : i32, i32
  }
  func.func @transform_7(%arg0: i32) -> (i32, i32) {
    %c0_i32 = arith.constant 0 : i32
    %c0_i32_0 = arith.constant 0 : i32
    %c0_i32_1 = arith.constant 0 : i32
    return %c0_i32, %c0_i32_0 : i32, i32
  }
  func.func @transform_8(%arg0: i32) -> (i32, i32, i32) {
    %c0_i32 = arith.constant 0 : i32
    %c0_i32_0 = arith.constant 0 : i32
    %c0_i32_1 = arith.constant 0 : i32
    return %arg0, %c0_i32, %c0_i32_0 : i32, i32, i32
  }
  func.func @transform_9(%arg0: i32) -> (i32, i32, i32) {
    %c0_i32 = arith.constant 0 : i32
    %c0_i32_0 = arith.constant 0 : i32
    %c0_i32_1 = arith.constant 0 : i32
    %c0_i32_2 = arith.constant 0 : i32
    return %c0_i32, %c0_i32_0, %c0_i32_1 : i32, i32, i32
  }
}

</mosaic_0001>

<bundles_post_ra>
// kernel: decoder_forward.1
= control target key start
LH: loop header
LB: loop body
LE: loop exit
PB: predicated region body
PF: predicated region fallthrough
CT: control target
= control target key end

     0   :  { %15 = vsyncpa [#allocation3], 0  ;;  %s1470_s0 = inlined_call_operand.vmem [shape: s32[1,16,1], index: 0, kind: input, shape index: {}]   ;;  %s1471_s1 = inlined_call_operand.vmem [shape: f32[2,16,128], index: 1, kind: input, shape index: {}, may-alias: {1,9}]   ;;  %s1472_s2 = inlined_call_operand.vmem [shape: bf16[16,128], index: 2, kind: input, shape index: {}]   ;;  %s1473_s3 = inlined_call_operand.hbm [shape: bf16[2,128,128], index: 3, kind: input, shape index: {}]   ;;  %s1474_s4 = inlined_call_operand.hbm [shape: bf16[2,128,128], index: 4, kind: input, shape index: {}]   ;;  %s1475_s5 = inlined_call_operand.vmem [shape: f32[2,1,128], index: 5, kind: input, shape index: {}]   ;;  %s1476_s6 = inlined_call_operand.vmem [shape: bf16[128,128], index: 6, kind: input, shape index: {}]   ;;  %s1477_s7 = inlined_call_operand.vmem [shape: f32[1,128], index: 7, kind: input, shape index: {}]   ;;  %s1478_s8 = inlined_call_operand.vmem [shape: f32[1,16,128], index: 8, kind: output, shape index: {0}]   ;;  %s1479_s9 = inlined_call_operand.vmem [shape: f32[2,16,128], index: 9, kind: output, shape index: {1}, may-alias: {1,9}]  }
   0x1   :  { %16 = vsyncpa [#allocation5], 0  ;;  %s1196_s30 = smov [#allocation2]   ;;  %s1148_s13 = scalar_lea.hbm %s1473_s3, 2048 }
   0x2   :  { %s28_s10 = sshll.u32 %s1196_s30, 4  ;;  %p1149_p0 = scmp.ne.s32.totalorder %s1473_s3, %s1148_s13  ;;  %s29_s10 = int_to_ptr.vmem [resolvable:$true] %s28_s10 }
   0x3   :  { %p1152_p1 = scmp.lt.u32.totalorder %s1148_s13, %s1473_s3 }
   0x5   :  { %p1154_p2 = pnand %p1152_p1, %p1149_p0 }
   0x7   :  { %1157 = shalt.err (!%p1154_p2)
}
   0x8   :  { %s1158_s18 = scalar_lea.vmem %s29_s10, 2048  ;;  %p1163_p4 = scmp.lt.s32.totalorder %s29_s10, %s29_s10 }
   0x9   :  { %p1159_p3 = scmp.ne.s32.totalorder %s29_s10, %s1158_s18  ;;  %p1164_p5 = scmp.lt.s32.totalorder %s1158_s18, %s1158_s18 }
   0xb   :  { %p1165_p6 = por %p1164_p5, %p1163_p4 }
   0xd   :  { %p1166_p7 = pnand %p1165_p6, %p1159_p3 }
   0xf   :  { %1169 = shalt.err (!%p1166_p7)
}
  0x10   :  { %s1197_s19 = smov 64   ;;  %s1198_s20 = smov 4  }
  0x11   :  { %34 = dma.hbm_to_vmem [thread:$0]  %s1473_s3, 2048, %s29_s10, [#allocation3], %s1197_s19, %s1197_s19, %s1198_s20  }
  0x12   :  { %s1199_s23 = smov [#allocation4]   ;;  %s1170_s27 = scalar_lea.hbm %s1474_s4, 2048 }
  0x13   :  { %s40_s24 = sshll.u32 %s1199_s23, 4  ;;  %p1171_p8 = scmp.ne.s32.totalorder %s1474_s4, %s1170_s27  ;;  %s41_s24 = int_to_ptr.vmem [resolvable:$true] %s40_s24 }
  0x14   :  { %p1174_p9 = scmp.lt.u32.totalorder %s1170_s27, %s1474_s4 }
  0x16   :  { %p1176_p10 = pnand %p1174_p9, %p1171_p8 }
  0x18   :  { %1179 = shalt.err (!%p1176_p10)
}
  0x19   :  { %s1180_s12 = scalar_lea.vmem %s41_s24, 2048  ;;  %p1185_p12 = scmp.lt.s32.totalorder %s41_s24, %s41_s24 }
  0x1a   :  { %p1181_p11 = scmp.ne.s32.totalorder %s41_s24, %s1180_s12  ;;  %p1186_p13 = scmp.lt.s32.totalorder %s1180_s12, %s1180_s12 }
  0x1c   :  { %p1187_p0 = por %p1186_p13, %p1185_p12 }
  0x1e   :  { %p1188_p1 = pnand %p1187_p0, %p1181_p11 }
  0x20   :  { %1191 = shalt.err (!%p1188_p1)
}
  0x21   :  { %46 = dma.hbm_to_vmem [thread:$0]  %s1474_s4, 2048, %s41_s24, [#allocation5], %s1197_s19, %s1197_s19, %s1198_s20  }
  0x22   :  { %1192 = dma.done.wait [#allocation3], 2048  }
  0x23   :  { %1193 = vsyncadd [#allocation3], 4294965248 }
  0x24   :  { %1194 = dma.done.wait [#allocation5], 2048  }
  0x25   :  { %1195 = vsyncadd [#allocation5], 4294965248  ;;  %v1200_v0 = vmov 0   ;;  %v1201_v1 = vmov 0.0   ;;  %v72_v2 = vld [vmem:[%s1470_s0] sm:$0xff]  ;;  %v73_v3 = vld [vmem:[%s1470_s0 + $0x8] sm:$0xff]  ;;  %v74_v13 = vlaneseq }
  0x26   :  { %1082 = vset.pattern.permute.xlu0 %v1200_v0  ;;  %967 = vmatprep.subr.bf16.mxu0 %v1201_v1  ;;  %v1083_v4 = vld [vmem:[%s1472_s2] sm:$0xff]   ;;  %vm1202_vm0 = vmmov 0   ;;  %v1086_v6 = vld [vmem:[#allocation4 + $0x8] sm:$0xff]   ;;  %v1088_v7 = vld [vmem:[#allocation4 + $0x10] sm:$0xff]   ;;  %vm97_vm3 = vcmask 130048   ;;  %s1203_s23 = smov 32  }
  0x27   :  { %973 = vmatprep.subr.bf16.mxu1 %v1201_v1  ;;  %77 = vperm.xlu0 %1082, %v72_v2   ;;  %v1084_v5 = vld [vmem:[#allocation4] sm:$0xff]   ;;  %v1090_v8 = vld [vmem:[#allocation4 + $0x18] sm:$0xff]   ;;  %v1094_v10 = vld [vmem:[#allocation4 + $0x28] sm:$0xff]   ;;  %v75_v14 = vand.u32 127, %v74_v13  ;;  %s1204_s24 = smov 96   ;;  %vm431_vm4 = vcmask 261120  }
  0x28   :  { %968 = vmatpush3.bf16.msra.mxu0 %v1083_v4  ;;  %969 = vmatprep.mubr.msk.bf16.mxu0 %vm1202_vm0, %v1201_v1  ;;  %v1092_v9 = vld [vmem:[#allocation4 + $0x20] sm:$0xff]   ;;  %v1096_v11 = vld [vmem:[#allocation4 + $0x30] sm:$0xff]   ;;  %v1098_v12 = vld [vmem:[#allocation4 + $0x38] sm:$0xff]  }
  0x29   :  { %993 = vmatprep.subr.bf16.mxu0 %v1201_v1  ;;  %989 = vmatprep.mubr.msk.bf16.mxu1 %vm1202_vm0, %v1201_v1  ;;  %v1085_v19 = vld [vmem:[#allocation2] sm:$0xff]   ;;  %v1087_v21 = vld [vmem:[#allocation2 + $0x8] sm:$0xff]   ;;  %v1089_v22 = vld [vmem:[#allocation2 + $0x10] sm:$0xff]  }
  0x2a   :  { %974 = vmatpush3.bf16.msra.mxu1 %v1084_v5  ;;  %v1091_v23 = vld [vmem:[#allocation2 + $0x18] sm:$0xff]   ;;  %v1093_v24 = vld [vmem:[#allocation2 + $0x20] sm:$0xff]   ;;  %v1095_v25 = vld [vmem:[#allocation2 + $0x28] sm:$0xff]  }
  0x2b   :  { %80 = vperm.xlu0 %1082, %v73_v3   ;;  %975 = vmatprep.subr.bf16.mxu1 %v1201_v1  ;;  %v1097_v26 = vld [vmem:[#allocation2 + $0x30] sm:$0xff]   ;;  %v1321_v27 = vld [vmem:[%s1471_s1] sm:$0xff]  ;;  %v1326_v28 = vld [vmem:[%s1471_s1 + $0x8] sm:$0xff] }
  0x2c   :  { %v161_v29 = vpack.c.bf16 %v1326_v28, %v1321_v27  ;;  %v1099_v30 = vld [vmem:[#allocation2 + $0x38] sm:$0xff]   ;;  %v878_v41 = vld [vmem:[%s1475_s5] ss:$0 sm:$0xff]  ;;  %v1102_v5 = vld [vmem:[#allocation4 + $0x48] sm:$0xff]  }
  0x2d   :  { %v1100_v3 = vld [vmem:[#allocation4 + $0x40] sm:$0xff]   ;;  %vm1395_vm5 = vmpackc.low %vm431_vm4, %vm431_vm4 }
  0x2e   :  { %976 = vmatpush3.bf16.msra.mxu1 %v1086_v6  ;;  %v1101_v4 = vld [vmem:[#allocation2 + $0x40] sm:$0xff]   ;;  %v1103_v6 = vld [vmem:[#allocation2 + $0x48] sm:$0xff]  }
  0x2f   :  { %977 = vmatprep.subr.bf16.mxu1 %v1201_v1  ;;  %v1109_v13 = vld [vmem:[#allocation2 + $0x60] sm:$0xff]  }
  0x32   :  { %978 = vmatpush3.bf16.msra.mxu1 %v1088_v7 }
  0x33   :  { %979 = vmatprep.subr.bf16.mxu1 %v1201_v1 }
  0x36   :  { %980 = vmatpush3.bf16.msra.mxu1 %v1090_v8  ;;  %v1104_v8 = vld [vmem:[#allocation4 + $0x50] sm:$0xff]  }
  0x37   :  { %981 = vmatprep.subr.bf16.mxu1 %v1201_v1 }
  0x3a   :  { %982 = vmatpush3.bf16.msra.mxu1 %v1092_v9  ;;  %v1105_v9 = vld [vmem:[#allocation2 + $0x50] sm:$0xff]  }
  0x3b   :  { %983 = vmatprep.subr.bf16.mxu1 %v1201_v1 }
  0x3e   :  { %984 = vmatpush3.bf16.msra.mxu1 %v1094_v10  ;;  %v1106_v10 = vld [vmem:[#allocation4 + $0x58] sm:$0xff]  }
  0x3f   :  { %985 = vmatprep.subr.bf16.mxu1 %v1201_v1 }
  0x42   :  { %986 = vmatpush3.bf16.msra.mxu1 %v1096_v11  ;;  %v1107_v11 = vld [vmem:[#allocation2 + $0x58] sm:$0xff]  }
  0x43   :  { %987 = vmatprep.subr.bf16.mxu1 %v1201_v1 }
  0x46   :  { %988 = vmatpush3.bf16.msra.mxu1 %v1098_v12  ;;  %v1108_v12 = vld [vmem:[#allocation4 + $0x60] sm:$0xff]  }
  0x47   :  { %1013 = vmatprep.subr.bf16.mxu1 %v1201_v1 }
  0x49   :  { %990 = vmatmul.mubr.bf16.vlgmr.msra.gmra.mrb[0].mxu1 %v161_v29 }
  0x4a   :  { %1029 = vmatprep.mubr.msk.bf16.mxu1 %vm1202_vm0, %v1201_v1  ;;  %1014 = vmatpush3.bf16.msra.mxu1 %v1100_v3 }
  0x4b   :  { %1015 = vmatprep.subr.bf16.mxu1 %v1201_v1 }
  0x4e   :  { %1016 = vmatpush3.bf16.msra.mxu1 %v1102_v5 }
  0x4f   :  { %1017 = vmatprep.subr.bf16.mxu1 %v1201_v1 }
  0x52   :  { %1018 = vmatpush3.bf16.msra.mxu1 %v1104_v8 }
  0x53   :  { %1019 = vmatprep.subr.bf16.mxu1 %v1201_v1 }
  0x56   :  { %1020 = vmatpush3.bf16.msra.mxu1 %v1106_v10 }
  0x57   :  { %1021 = vmatprep.subr.bf16.mxu1 %v1201_v1 }
  0x5a   :  { %1022 = vmatpush3.bf16.msra.mxu1 %v1108_v12  ;;  %v1119_v12 = vld [vmem:[%s1476_s6 + $0x18] sm:$0xff]  }
  0x5b   :  { %1023 = vmatprep.subr.bf16.mxu1 %v1201_v1 }
  0xa6   :  { %v78_v15 = vpop.permute.xlu0 %77 }
  0xa7   :  { %vm82_vm1 = vcmp.eq.s32.totalorder %v75_v14, %v78_v15  ;;  %v1111_v15 = vld [vmem:[#allocation2 + $0x68] sm:$0xff]  }
  0xa8   :  { %v858_v17 = vsel %vm82_vm1, 1.0, %v1201_v1 }
  0xaa   :  { %v81_v16 = vpop.permute.xlu0 %80 }
  0xab   :  { %vm83_vm2 = vcmp.eq.s32.totalorder %v75_v14, %v81_v16  ;;  %v1110_v14 = vld [vmem:[#allocation4 + $0x68] sm:$0xff]   ;;  %v1112_v16 = vld [vmem:[#allocation4 + $0x70] sm:$0xff]  }
  0xac   :  { %v859_v18 = vsel %vm83_vm2, 1.0, %v1201_v1  ;;  %1024 = vmatpush3.bf16.msra.mxu1 %v1110_v14  ;;  %v1121_v14 = vld [vmem:[%s1476_s6 + $0x28] sm:$0xff]  }
  0xad   :  { %v88_v20 = vpack.c.bf16 %v859_v18, %v858_v17  ;;  %v1113_v17 = vld [vmem:[#allocation2 + $0x70] sm:$0xff]   ;;  %1025 = vmatprep.subr.bf16.mxu1 %v1201_v1  ;;  %v1114_v18 = vld [vmem:[#allocation4 + $0x78] sm:$0xff]  }
  0xaf   :  { %970 = vmatmul.mubr.msk.bf16.vlgmr.msra.gmra.mrb[0].mxu0 %vm97_vm3, %v88_v20  ;;  %v1376_v20 = vld [vmem:[%s1471_s1 + $0x18] sm:$0xff] }
  0xb0   :  { %994 = vmatpush3.bf16.msra.mxu0 %v1085_v19  ;;  %1009 = vmatprep.mubr.msk.bf16.mxu0 %vm1202_vm0, %v1201_v1  ;;  %v1371_v19 = vld [vmem:[%s1471_s1 + $0x10] sm:$0xff] }
  0xb1   :  { %995 = vmatprep.subr.bf16.mxu0 %v1201_v1  ;;  %1026 = vmatpush3.bf16.msra.mxu1 %v1112_v16  ;;  %v1123_v16 = vld [vmem:[%s1476_s6 + $0x38] sm:$0xff]  }
  0xb2   :  { %1027 = vmatprep.subr.bf16.mxu1 %v1201_v1 }
  0xb4   :  { %996 = vmatpush3.bf16.msra.mxu0 %v1087_v21  ;;  %v457_v21 = vpack.c.bf16 %v1376_v20, %v1371_v19 }
  0xb5   :  { %997 = vmatprep.subr.bf16.mxu0 %v1201_v1  ;;  %1028 = vmatpush3.bf16.msra.mxu1 %v1114_v18 }
  0xb6   :  { %1053 = vmatprep.subr.bf16.mxu1 %v1201_v1 }
  0xb8   :  { %998 = vmatpush3.bf16.msra.mxu0 %v1089_v22  ;;  %v1115_v22 = vld [vmem:[#allocation2 + $0x78] sm:$0xff]   ;;  %1030 = vmatmul.mubr.bf16.vlgmr.msra.gmra.mrb[4].mxu1 %v457_v21 }
  0xb9   :  { %999 = vmatprep.subr.bf16.mxu0 %v1201_v1  ;;  %1069 = vmatprep.mubr.msk.bf16.mxu1 %vm1202_vm0, %v1201_v1 }
  0xbc   :  { %1000 = vmatpush3.bf16.msra.mxu0 %v1091_v23 }
  0xbd   :  { %1001 = vmatprep.subr.bf16.mxu0 %v1201_v1 }
  0xc0   :  { %1002 = vmatpush3.bf16.msra.mxu0 %v1093_v24 }
  0xc1   :  { %1003 = vmatprep.subr.bf16.mxu0 %v1201_v1 }
  0xc4   :  { %1004 = vmatpush3.bf16.msra.mxu0 %v1095_v25 }
  0xc5   :  { %1005 = vmatprep.subr.bf16.mxu0 %v1201_v1 }
  0xc8   :  { %1006 = vmatpush3.bf16.msra.mxu0 %v1097_v26 }
  0xc9   :  { %1007 = vmatprep.subr.bf16.mxu0 %v1201_v1 }
  0xcc   :  { %1008 = vmatpush3.bf16.msra.mxu0 %v1099_v30 }
  0xcd   :  { %1033 = vmatprep.subr.bf16.mxu0 %v1201_v1 }
 0x11c   :  { %v260_v36 = vpop.f32.mrb[0].mxu1 }
 0x11d   :  { %v991_v37 = vpop.f32.mrb[1].mxu1 }
 0x11e   :  { %v263_v38 = vpop.f32.mrb[2].mxu1 }
 0x11f   :  { %v992_v39 = vpop.f32.mrb[3].mxu1 }
 0x182   :  { %v135_v31 = vpop.f32.mrb[0].mxu0 }
 0x183   :  { %v971_v32 = vpop.f32.mrb[1].mxu0 }
 0x184   :  { %v138_v33 = vpop.f32.mrb[2].mxu0 }
 0x185   :  { %v144_v34 = vpack.c.bf16 %v138_v33, %v135_v31  ;;  %v972_v35 = vpop.f32.mrb[3].mxu0 }
 0x187   :  { %1010 = vmatmul.mubr.bf16.vlgmr.msra.gmra.mrb[4].mxu0 %v144_v34 }
 0x188   :  { %1049 = vmatprep.mubr.msk.bf16.mxu0 %vm1202_vm0, %v1201_v1  ;;  %1034 = vmatpush3.bf16.msra.mxu0 %v1101_v4 }
 0x189   :  { %1035 = vmatprep.subr.bf16.mxu0 %v1201_v1 }
 0x18c   :  { %1036 = vmatpush3.bf16.msra.mxu0 %v1103_v6 }
 0x18d   :  { %1037 = vmatprep.subr.bf16.mxu0 %v1201_v1 }
 0x190   :  { %1038 = vmatpush3.bf16.msra.mxu0 %v1105_v9  ;;  %v1117_v9 = vld [vmem:[%s1476_s6 + $0x8] sm:$0xff]  }
 0x191   :  { %1039 = vmatprep.subr.bf16.mxu0 %v1201_v1 }
 0x194   :  { %1040 = vmatpush3.bf16.msra.mxu0 %v1107_v11  ;;  %v1118_v11 = vld [vmem:[%s1476_s6 + $0x10] sm:$0xff]  }
 0x195   :  { %1041 = vmatprep.subr.bf16.mxu0 %v1201_v1 }
 0x198   :  { %1042 = vmatpush3.bf16.msra.mxu0 %v1109_v13  ;;  %v1120_v13 = vld [vmem:[%s1476_s6 + $0x20] sm:$0xff]  }
 0x199   :  { %1043 = vmatprep.subr.bf16.mxu0 %v1201_v1 }
 0x19c   :  { %1044 = vmatpush3.bf16.msra.mxu0 %v1111_v15  ;;  %v1122_v15 = vld [vmem:[%s1476_s6 + $0x30] sm:$0xff]  }
 0x19d   :  { %1045 = vmatprep.subr.bf16.mxu0 %v1201_v1 }
 0x1a0   :  { %1046 = vmatpush3.bf16.msra.mxu0 %v1113_v17 }
 0x1a1   :  { %1047 = vmatprep.subr.bf16.mxu0 %v1201_v1 }
 0x1a4   :  { %1048 = vmatpush3.bf16.msra.mxu0 %v1115_v22 }
 0x25a   :  { %v349_v40 = vpop.f32.mrb[4].mxu0 }
 0x25b   :  { %v350_v42 = vadd.f32 %v349_v40, %v260_v36  ;;  %v1011_v43 = vpop.f32.mrb[5].mxu0 }
 0x25c   :  { %v352_v44 = vpop.f32.mrb[6].mxu0 }
 0x25d   :  { %v363_v45 = vadd.f32 %v878_v41, %v350_v42  ;;  %v353_v46 = vadd.f32 %v352_v44, %v263_v38  ;;  %v1012_v47 = vpop.f32.mrb[7].mxu0 }
 0x25f   :  { %379 = vrot.lane.b32.xlu1 %v363_v45, %s1203_s23  ;;  %v364_v48 = vadd.f32 %v878_v41, %v353_v46  ;;  %v879_v49 = vmul.f32 -1.442695, %v363_v45  ;;  %v557_v41 = vpop.f32.mrb[4].mxu1  ;;  %v903_v46 = vld [vmem:[%s1475_s5 + $0x1] ss:$0 sm:$0xff] }
 0x260   :  { %v1031_v42 = vpop.f32.mrb[5].mxu1 }
 0x261   :  { %1124 = vpow2.f32 %v879_v49  ;;  %v880_v50 = vmul.f32 -1.442695, %v364_v48  ;;  %v560_v43 = vpop.f32.mrb[6].mxu1 }
 0x262   :  { %v1032_v44 = vpop.f32.mrb[7].mxu1 }
 0x263   :  { %381 = vrot.lane.b32.xlu1 %v364_v48, %s1203_s23  ;;  %1126 = vpow2.f32 %v880_v50 }
 0x26b   :  { %v1125_v51 = vpop.eup %1124 }
 0x26c   :  { %v371_v52 = vadd.f32 1.0, %v1125_v51 }
 0x26d   :  { %v1127_v53 = vpop.eup %1126 }
 0x26e   :  { %1128 = vrcp.f32 %v371_v52  ;;  %v372_v54 = vadd.f32 1.0, %v1127_v53 }
 0x270   :  { %1130 = vrcp.f32 %v372_v54 }
 0x278   :  { %v1340_v55 = vpop.eup %1128 }
 0x279   :  { %v399_v24 = vsub.f32 1.0, %v1340_v55 }
 0x27a   :  { %v1344_v58 = vpop.eup %1130 }
 0x27b   :  { %v400_v30 = vsub.f32 1.0, %v1344_v58 }
 0x2d1   :  { %v380_v56 = vpop.permute.xlu1 %379 }
 0x2d2   :  { %v385_v57 = vmul.f32 %v1340_v55, %v380_v56 }
 0x2d4   :  { %389 = vrot.lane.b32.xlu0 %v385_v57, %s1197_s19 }
 0x2d5   :  { %v382_v59 = vpop.permute.xlu1 %381 }
 0x2d6   :  { %v386_v60 = vmul.f32 %v1344_v58, %v382_v59 }
 0x2d8   :  { %391 = vrot.lane.b32.xlu1 %v386_v60, %s1197_s19 }
 0x346   :  { %v390_v61 = vpop.permute.xlu0 %389 }
 0x347   :  { %v395_v62 = vadd.f32 %v390_v61, %v363_v45 }
 0x349   :  { %1132 = vtanh.f32 %v395_v62 }
 0x34a   :  { %v392_v63 = vpop.permute.xlu1 %391 }
 0x34b   :  { %v396_v0 = vadd.f32 %v392_v63, %v364_v48 }
 0x34d   :  { %1134 = vtanh.f32 %v396_v0 }
 0x353   :  { %v1133_v2 = vpop.eup %1132 }
 0x354   :  { %403 = vrot.lane.b32.xlu0 %v1133_v2, %s1204_s24 }
 0x357   :  { %v1135_v7 = vpop.eup %1134 }
 0x358   :  { %413 = vrot.lane.b32.xlu0 %v1321_v27, %s1203_s23  ;;  %405 = vrot.lane.b32.xlu1 %v1135_v7, %s1204_s24  ;;  %v1116_v7 = vld [vmem:[%s1476_s6] sm:$0xff]  }
 0x359   :  { %1054 = vmatpush3.bf16.msra.mxu1 %v1116_v7 }
 0x35a   :  { %1055 = vmatprep.subr.bf16.mxu1 %v1201_v1 }
 0x35c   :  { %415 = vrot.lane.b32.xlu1 %v1326_v28, %s1203_s23 }
 0x35d   :  { %1056 = vmatpush3.bf16.msra.mxu1 %v1117_v9 }
 0x35e   :  { %1057 = vmatprep.subr.bf16.mxu1 %v1201_v1 }
 0x361   :  { %1058 = vmatpush3.bf16.msra.mxu1 %v1118_v11 }
 0x362   :  { %1059 = vmatprep.subr.bf16.mxu1 %v1201_v1 }
 0x365   :  { %1060 = vmatpush3.bf16.msra.mxu1 %v1119_v12 }
 0x366   :  { %1061 = vmatprep.subr.bf16.mxu1 %v1201_v1 }
 0x369   :  { %1062 = vmatpush3.bf16.msra.mxu1 %v1120_v13 }
 0x36a   :  { %1063 = vmatprep.subr.bf16.mxu1 %v1201_v1 }
 0x36d   :  { %1064 = vmatpush3.bf16.msra.mxu1 %v1121_v14 }
 0x36e   :  { %1065 = vmatprep.subr.bf16.mxu1 %v1201_v1 }
 0x371   :  { %1066 = vmatpush3.bf16.msra.mxu1 %v1122_v15 }
 0x372   :  { %1067 = vmatprep.subr.bf16.mxu1 %v1201_v1 }
 0x375   :  { %1068 = vmatpush3.bf16.msra.mxu1 %v1123_v16 }
 0x3c6   :  { %v404_v23 = vpop.permute.xlu0 %403 }
 0x3c7   :  { %v409_v27 = vmul.f32 %v404_v23, %v399_v24 }
 0x3ca   :  { %v414_v25 = vpop.permute.xlu0 %413  ;;  %v406_v26 = vpop.permute.xlu1 %405 }
 0x3cb   :  { %v419_v28 = vmul.f32 %v1340_v55, %v414_v25  ;;  %v410_v32 = vmul.f32 %v406_v26, %v400_v30 }
 0x3cd   :  { %v421_v29 = vadd.f32 %v419_v28, %v409_v27 }
 0x3ce   :  { %v416_v31 = vpop.permute.xlu1 %415 }
 0x3cf   :  { %v420_v33 = vmul.f32 %v1344_v58, %v416_v31  ;;  %425 = vrot.lane.b32.xlu0 %v421_v29, %s1204_s24 }
 0x3d1   :  { %v422_v34 = vadd.f32 %v420_v33, %v410_v32  ;;  %v908_v33 = vld [vmem:[%s1477_s7] ss:$0 sm:$0xff] }
 0x3d3   :  { %427 = vrot.lane.b32.xlu1 %v422_v34, %s1204_s24 }
 0x441   :  { %v426_v35 = vpop.permute.xlu0 %425 }
 0x442   :  { %v432_v36 = vsel %vm431_vm4, %v426_v35, 0.0 }
 0x443   :  { %434 = vst [vmem:[%s1479_s9] sm:$0xff] %v432_v36 }
 0x445   :  { %v428_v37 = vpop.permute.xlu1 %427 }
 0x446   :  { %v433_v39 = vsel %vm431_vm4, %v428_v37, 0.0  ;;  %v900_v40 = vpack.c.bf16 %v428_v37, %v426_v35 }
 0x447   :  { %435 = vst [vmem:[%s1479_s9 + $0x8] sm:$0xff] %v433_v39 }
 0x448   :  { %1050 = vmatmul.mubr.msk.bf16.vlgmr.msra.gmra.mrb[8].mxu0 %vm1395_vm5, %v900_v40 }
 0x51b   :  { %v646_v45 = vpop.f32.mrb[8].mxu0 }
 0x51c   :  { %v647_v47 = vadd.f32 %v646_v45, %v557_v41  ;;  %v1051_v48 = vpop.f32.mrb[9].mxu0 }
 0x51d   :  { %v649_v49 = vpop.f32.mrb[10].mxu0 }
 0x51e   :  { %v661_v50 = vadd.f32 %v903_v46, %v647_v47  ;;  %v650_v51 = vadd.f32 %v649_v49, %v560_v43  ;;  %v1052_v52 = vpop.f32.mrb[11].mxu0 }
 0x520   :  { %v662_v53 = vadd.f32 %v903_v46, %v650_v51  ;;  %677 = vrot.lane.b32.xlu0 %v661_v50, %s1203_s23  ;;  %v904_v54 = vmul.f32 -1.442695, %v661_v50 }
 0x522   :  { %679 = vrot.lane.b32.xlu1 %v662_v53, %s1203_s23  ;;  %v905_v55 = vmul.f32 -1.442695, %v662_v53  ;;  %1136 = vpow2.f32 %v904_v54 }
 0x524   :  { %1138 = vpow2.f32 %v905_v55 }
 0x52c   :  { %v1137_v56 = vpop.eup %1136 }
 0x52d   :  { %v669_v58 = vadd.f32 1.0, %v1137_v56 }
 0x52e   :  { %v1139_v57 = vpop.eup %1138 }
 0x52f   :  { %v670_v59 = vadd.f32 1.0, %v1139_v57  ;;  %1140 = vrcp.f32 %v669_v58 }
 0x531   :  { %1142 = vrcp.f32 %v670_v59 }
 0x539   :  { %v1141_v60 = vpop.eup %1140 }
 0x53b   :  { %v1143_v63 = vpop.eup %1142 }
 0x53c   :  { %v698_v22 = vsub.f32 1.0, %v1143_v63 }
 0x592   :  { %v678_v61 = vpop.permute.xlu0 %677 }
 0x593   :  { %v683_v62 = vmul.f32 %v1141_v60, %v678_v61 }
 0x594   :  { %v680_v0 = vpop.permute.xlu1 %679 }
 0x595   :  { %v684_v2 = vmul.f32 %v1143_v63, %v680_v0  ;;  %687 = vrot.lane.b32.xlu0 %v683_v62, %s1197_s19 }
 0x597   :  { %689 = vrot.lane.b32.xlu1 %v684_v2, %s1197_s19 }
 0x607   :  { %v688_v3 = vpop.permute.xlu0 %687 }
 0x608   :  { %v693_v4 = vadd.f32 %v688_v3, %v661_v50 }
 0x609   :  { %v690_v5 = vpop.permute.xlu1 %689 }
 0x60a   :  { %1144 = vtanh.f32 %v693_v4  ;;  %v694_v6 = vadd.f32 %v690_v5, %v662_v53 }
 0x60c   :  { %1146 = vtanh.f32 %v694_v6 }
 0x614   :  { %v1145_v8 = vpop.eup %1144 }
 0x615   :  { %701 = vrot.lane.b32.xlu0 %v1145_v8, %s1204_s24 }
 0x616   :  { %v1147_v10 = vpop.eup %1146 }
 0x617   :  { %703 = vrot.lane.b32.xlu1 %v1147_v10, %s1204_s24 }
 0x619   :  { %711 = vrot.lane.b32.xlu0 %v1371_v19, %s1203_s23  ;;  %v697_v19 = vsub.f32 1.0, %v1141_v60 }
 0x61b   :  { %713 = vrot.lane.b32.xlu1 %v1376_v20, %s1203_s23 }
 0x687   :  { %v702_v17 = vpop.permute.xlu0 %701 }
 0x688   :  { %v707_v21 = vmul.f32 %v702_v17, %v697_v19 }
 0x689   :  { %v704_v18 = vpop.permute.xlu1 %703 }
 0x68a   :  { %v708_v25 = vmul.f32 %v704_v18, %v698_v22 }
 0x68b   :  { %v712_v20 = vpop.permute.xlu0 %711 }
 0x68c   :  { %v717_v23 = vmul.f32 %v1141_v60, %v712_v20 }
 0x68d   :  { %v714_v24 = vpop.permute.xlu1 %713 }
 0x68e   :  { %v719_v26 = vadd.f32 %v717_v23, %v707_v21  ;;  %v718_v27 = vmul.f32 %v1143_v63, %v714_v24 }
 0x690   :  { %v720_v28 = vadd.f32 %v718_v27, %v708_v25  ;;  %723 = vrot.lane.b32.xlu0 %v719_v26, %s1204_s24 }
 0x692   :  { %725 = vrot.lane.b32.xlu1 %v720_v28, %s1204_s24 }
 0x702   :  { %v724_v1 = vpop.permute.xlu0 %723 }
 0x703   :  { %v729_v29 = vsel %vm431_vm4, %v724_v1, 0.0 }
 0x704   :  { %906 = vst [vmem:[%s1479_s9 + $0x10] sm:$0xff] %v729_v29  ;;  %v726_v30 = vpop.permute.xlu1 %725 }
 0x705   :  { %v730_v31 = vsel %vm431_vm4, %v726_v30, 0.0  ;;  %v918_v32 = vpack.c.bf16 %v726_v30, %v724_v1 }
 0x706   :  { %907 = vst [vmem:[%s1479_s9 + $0x18] sm:$0xff] %v730_v31 }
 0x707   :  { %1070 = vmatmul.mubr.msk.bf16.vlgmr.msra.gmra.mrb[8].mxu1 %vm1395_vm5, %v918_v32 }
 0x7da   :  { %v839_v34 = vpop.f32.mrb[8].mxu1 }
 0x7db   :  { %v840_v35 = vadd.f32 %v908_v33, %v839_v34  ;;  %v1071_v36 = vpop.f32.mrb[9].mxu1 }
 0x7dc   :  { %v842_v37 = vpop.f32.mrb[10].mxu1 }
 0x7dd   :  { %846 = vst [vmem:[%s1478_s8] sm:$0xff] %v840_v35  ;;  %v843_v39 = vadd.f32 %v908_v33, %v842_v37  ;;  %v1072_v40 = vpop.f32.mrb[11].mxu1 }
 0x7df   :  { %847 = vst [vmem:[%s1478_s8 + $0x8] sm:$0xff] %v843_v39 }
 0x7e0   :  { %856 = vsyncpa [#allocation3], 1 }
 0x7e1   :  { %857 = vsyncpa [#allocation5], 1 }

</bundles_post_ra>
